<compile_context>
chip_gen: v5e
topology: v5e:2x2
jax: 0.10.0
libtpu: 0.0.40
codegen_flags: <defaults>
</compile_context>

<pallas_src>
import functools

import jax
import jax.numpy as jnp
from jax.experimental import pallas as pl
from jax.experimental.pallas import tpu as pltpu


# ---------------------------------------------------------------------------
# Kernels
# ---------------------------------------------------------------------------

def residual_kernel(x_ref, w_ref, b_ref, o_ref):
    """o = x + relu(x @ w + b); whole hidden dim in one block (small H)."""
    x = x_ref[...]                                                   # native dtype
    h = jnp.dot(x, w_ref[...], preferred_element_type=jnp.float32)  # MXU, f32 acc
    h = jnp.maximum(h + b_ref[...], 0.0)                            # bias + ReLU
    o_ref[...] = (x + h).astype(o_ref.dtype)                        # residual add


def residual_colstream_kernel(x_ref, xres_ref, w_ref, b_ref, o_ref):
    """Large-H path: W streamed by output columns.

    x_ref:   (bm, H)  — resident across the j axis (DMA'd once per batch tile).
    xres_ref:(bm, tn) — residual columns for this j block (lane-dense).
    w_ref:   (H, tn), b_ref: (1, tn), o_ref: (bm, tn).
    No K-axis reduction, so no f32 accumulator scratch is needed.
    """
    h = jnp.dot(x_ref[...], w_ref[...], preferred_element_type=jnp.float32)
    h = jnp.maximum(h + b_ref[...], 0.0)
    o_ref[...] = (xres_ref[...] + h).astype(o_ref.dtype)


# ---------------------------------------------------------------------------
# Hardware-aware tiling heuristics
# ---------------------------------------------------------------------------

@functools.lru_cache(maxsize=None)
def _tpu_caps():
    """(vmem_capacity_bytes, num_tensorcores_per_chip), conservative fallbacks."""
    vmem = 64 * 1024 * 1024           # smallest in the fleet (v7x, per TC)
    n_tc = 1
    try:
        info = pltpu.get_tpu_info()
        v = int(getattr(info, "vmem_capacity_bytes", 0) or 0)
        if v > 0:
            vmem = v
    except Exception:
        pass
    try:
        kind = jax.devices()[0].device_kind.lower()
        if "v7" in kind:
            n_tc = 2
            vmem = min(vmem, 64 * 1024 * 1024)   # per-TC budget on v7x
    except Exception:
        pass
    return vmem, n_tc


def _pick_bm(n, hdim, out_cols, itemsize, w_vmem_bytes, *, vmem_capacity, n_tc):
    """Largest batch tile dividing n that keeps activation buffers in ~50% VMEM.

    v7x (2 TCs): prefer an even grid with >=2 steps per core so the 'parallel'
    batch axis shards across both TensorCores with pipelined DMA.
    v5e/v6e (1 TC): the grid is a sequential loop, so a single big step is best.
    """
    budget = max(vmem_capacity // 2 - w_vmem_bytes, 1 << 20)
    # per-row bytes: double-buffered x tile + double-buffered out tile
    # + residual/f32-matmul-result slack.
    per_row = 2 * hdim * itemsize + 4 * out_cols * itemsize + 4 * out_cols
    max_rows = max(budget // per_row, 8)

    cands = [c for c in (8192, 4096, 2048, 1024, 512, 256, 128, 64, 32, 16, 8)
             if c <= max_rows and n % c == 0]
    if not cands:
        # TODO(synk): ragged batches (no 8-aligned divisor of n) would need
        # padding/masked stores; fall back to a single full-batch block.
        return n

    if n_tc >= 2:
        for c in cands:                       # even grid, >= 2 steps per core
            steps = n // c
            if steps % n_tc == 0 and steps >= 2 * n_tc:
                return c
        for c in cands:                       # at least balanced across cores
            if (n // c) % n_tc == 0:
                return c
    return cands[0]


def _pick_tn(hdim, w_itemsize, *, vmem_capacity):
    """Output-column tile for weight streaming: W block ~8-16 MiB, a multiple
    of 256 when possible (v6e/v7x 256x256 MXU), falling back to 128."""
    target = min(16 * 1024 * 1024, vmem_capacity // 6)
    smallest = None
    for tn in (2048, 1024, 512, 256, 128):
        if hdim % tn:
            continue
        smallest = tn
        if hdim * tn * w_itemsize <= target:
            return tn
    return smallest   # None => hdim has no 128-multiple divisor; keep W resident


def _vmem_limit(estimate_bytes, vmem_capacity):
    cap = int(vmem_capacity * 0.85)
    return min(cap, max(2 * estimate_bytes, 32 * 1024 * 1024))


def _cost_estimate(n, hdim, x_itemsize, w_itemsize, b_itemsize):
    return pl.CostEstimate(
        flops=2 * n * hdim * hdim + 3 * n * hdim,   # matmul + bias/relu/add
        transcendentals=0,
        bytes_accessed=(2 * n * hdim * x_itemsize   # x read + y write
                        + hdim * hdim * w_itemsize
                        + hdim * b_itemsize))


# ---------------------------------------------------------------------------
# pallas_call wrappers
# ---------------------------------------------------------------------------

def _call_resident(x, w, b2d, *, bm, vmem_capacity):
    """Small-H path: the whole (H, H) weight stays resident in VMEM."""
    n, hdim = x.shape
    est = (4 * bm * hdim * x.dtype.itemsize          # dbl-buffered x + out tiles
           + 2 * hdim * hdim * w.dtype.itemsize      # W (dbl-buffered)
           + 2 * hdim * b2d.dtype.itemsize
           + bm * hdim * 4)                          # f32 matmul result
    return pl.pallas_call(
        residual_kernel,
        out_shape=jax.ShapeDtypeStruct((n, hdim), x.dtype),
        grid_spec=pltpu.PrefetchScalarGridSpec(
            num_scalar_prefetch=0,
            grid=(n // bm,),
            in_specs=[
                pl.BlockSpec((bm, hdim), lambda i: (i, 0)),     # x tile
                pl.BlockSpec((hdim, hdim), lambda i: (0, 0)),   # W (grid-invariant)
                pl.BlockSpec((1, hdim), lambda i: (0, 0)),      # b
            ],
            out_specs=pl.BlockSpec((bm, hdim), lambda i: (i, 0)),
        ),
        compiler_params=pltpu.CompilerParams(
            dimension_semantics=("parallel",),
            vmem_limit_bytes=_vmem_limit(est, vmem_capacity)),
        cost_estimate=_cost_estimate(n, hdim, x.dtype.itemsize,
                                     w.dtype.itemsize, b2d.dtype.itemsize),
    )(x, w, b2d)


def _call_colstream(x, w, b2d, *, bm, tn, vmem_capacity):
    """Large-H path: stream W by output columns; x tile resident across j."""
    n, hdim = x.shape
    est = (2 * bm * hdim * x.dtype.itemsize          # x tile (dbl-buffered)
           + 2 * bm * tn * x.dtype.itemsize          # residual cols (dbl-buffered)
           + 2 * bm * tn * x.dtype.itemsize          # out tile (dbl-buffered)
           + 2 * hdim * tn * w.dtype.itemsize        # streamed W block
           + 2 * tn * b2d.dtype.itemsize
           + bm * tn * 4)                            # f32 matmul result
    return pl.pallas_call(
        residual_colstream_kernel,
        out_shape=jax.ShapeDtypeStruct((n, hdim), x.dtype),
        grid_spec=pltpu.PrefetchScalarGridSpec(
            num_scalar_prefetch=0,
            grid=(n // bm, hdim // tn),
            in_specs=[
                # Block index stays (i, 0) across j => DMA'd once per batch tile.
                pl.BlockSpec((bm, hdim), lambda i, j: (i, 0)),  # x for matmul
                pl.BlockSpec((bm, tn), lambda i, j: (i, j)),    # x residual cols
                pl.BlockSpec((hdim, tn), lambda i, j: (0, j)),  # streamed W cols
                pl.BlockSpec((1, tn), lambda i, j: (0, j)),     # streamed bias
            ],
            out_specs=pl.BlockSpec((bm, tn), lambda i, j: (i, j)),
        ),
        compiler_params=pltpu.CompilerParams(
            dimension_semantics=("parallel", "arbitrary"),
            vmem_limit_bytes=_vmem_limit(est, vmem_capacity)),
        cost_estimate=_cost_estimate(n, hdim, x.dtype.itemsize,
                                     w.dtype.itemsize, b2d.dtype.itemsize),
    )(x, x, w, b2d)


# ---------------------------------------------------------------------------
# Public entry point
# ---------------------------------------------------------------------------

def residual_forward(x, w, b, *, bm=None, tn=None):
    """y = x + relu(x @ w + b), tiled over the batch dim (and over the output
    columns of W when the resident weight would crowd VMEM).

    x: (N, H) activations.  w: (H, H) laid out so y = x @ w + b (PyTorch's W^T,
    transposed once at parameter setup).  b: (H,).
    """
    n, hdim = x.shape
    assert w.shape == (hdim, hdim) and b.shape == (hdim,)
    vmem_capacity, n_tc = _tpu_caps()
    b2d = b.reshape(1, hdim)

    # Weight-streaming decision: stream W by output columns when the resident
    # (double-buffered) HxH weight would claim more than ~1/4 of VMEM.
    w_resident_bytes = 2 * hdim * hdim * w.dtype.itemsize
    if tn is None and w_resident_bytes > vmem_capacity // 4:
        tn = _pick_tn(hdim, w.dtype.itemsize, vmem_capacity=vmem_capacity)
    if tn is not None and (tn >= hdim or hdim % tn != 0 or tn % 128 != 0):
        tn = None   # cannot tile columns cleanly; keep W resident

    if tn is None:
        if bm is None:
            bm = _pick_bm(n, hdim, hdim, x.dtype.itemsize, w_resident_bytes,
                          vmem_capacity=vmem_capacity, n_tc=n_tc)
        assert n % bm == 0, (n, bm)
        return _call_resident(x, w, b2d, bm=bm, vmem_capacity=vmem_capacity)

    w_block_bytes = 2 * hdim * tn * w.dtype.itemsize
    if bm is None:
        bm = _pick_bm(n, hdim, tn, x.dtype.itemsize, w_block_bytes,
                      vmem_capacity=vmem_capacity, n_tc=n_tc)
    assert n % bm == 0, (n, bm)
    return _call_colstream(x, w, b2d, bm=bm, tn=tn, vmem_capacity=vmem_capacity)


# ---------------------------------------------------------------------------
# Demo / correctness checks
# ---------------------------------------------------------------------------

if __name__ == "__main__":
    key = jax.random.PRNGKey(0)
    kx, kw, kb = jax.random.split(key, 3)

    # ---- small, lane-dense shape: resident-weight path ---------------------
    N, H = 512, 128
    x = jax.random.normal(kx, (N, H), dtype=jnp.float32)

    # PyTorch nn.Linear(H, H): W is (H_out, H_in), b is (H_out,).
    bound = 1.0 / (H ** 0.5)
    w_torch = jax.random.uniform(kw, (H, H), minval=-bound, maxval=bound,
                                 dtype=jnp.float32)
    b = jax.random.uniform(kb, (H,), minval=-bound, maxval=bound,
                           dtype=jnp.float32)
    w = w_torch.T   # transposed once at parameter setup -> kernel does x @ w + b

    # f32: exact semantics check.
    y = jax.block_until_ready(residual_forward(x, w, b))
    y_ref = x + jnp.maximum(x @ w + b, 0.0)
    assert jnp.allclose(y, y_ref, atol=1e-5, rtol=1e-5), "f32 mismatch vs reference"

    # bf16: native MXU dtype with f32 accumulation.
    xb, wb = x.astype(jnp.bfloat16), w.astype(jnp.bfloat16)
    yb = jax.block_until_ready(residual_forward(xb, wb, b))
    xb32, wb32 = xb.astype(jnp.float32), wb.astype(jnp.float32)
    yb_ref = (xb32 + jnp.maximum(xb32 @ wb32 + b, 0.0)).astype(jnp.bfloat16)
    assert jnp.allclose(yb.astype(jnp.float32), yb_ref.astype(jnp.float32),
                        atol=2e-2, rtol=2e-2), "bf16 mismatch vs reference"

    # ---- exercise the weight-streaming (column-tiled) path at small scale ---
    N2, H2 = 256, 256
    k2x, k2w, k2b = jax.random.split(jax.random.PRNGKey(1), 3)
    x2 = jax.random.normal(k2x, (N2, H2), dtype=jnp.float32)
    w2 = jax.random.normal(k2w, (H2, H2), dtype=jnp.float32) * (1.0 / H2 ** 0.5)
    b2 = jax.random.normal(k2b, (H2,), dtype=jnp.float32) * 0.1
    y2 = jax.block_until_ready(residual_forward(x2, w2, b2, tn=128))
    y2_ref = x2 + jnp.maximum(x2 @ w2 + b2, 0.0)
    assert jnp.allclose(y2, y2_ref, atol=1e-3, rtol=1e-3), "colstream mismatch"

    print("KERNEL_OK")
</pallas_src>

<mosaic_0001>
module attributes {stable_mosaic.version = 11 : i64} {
  func.func @residual_kernel(%arg0: i32, %arg1: memref<512x128xf32, #tpu.memory_space<vmem>>, %arg2: memref<128x128xf32, #tpu.memory_space<vmem>>, %arg3: memref<1x128xf32, #tpu.memory_space<vmem>>, %arg4: memref<512x128xf32, #tpu.memory_space<vmem>>) attributes {dimension_semantics = [#tpu.dimension_semantics<parallel>], iteration_bounds = array<i64: 1>, scalar_prefetch = 0 : i64, scratch_operands = 0 : i64, tpu.core_type = #tpu.core_type<tc>, window_params = [{transform_indices = @transform_0, window_bounds = array<i64: 512, 128>}, {pipeline_mode = #tpu.pipeline_mode<synchronous>, transform_indices = @transform_1, window_bounds = array<i64: 128, 128>}, {pipeline_mode = #tpu.pipeline_mode<synchronous>, transform_indices = @transform_2, window_bounds = array<i64: 1, 128>}, {transform_indices = @transform_3, window_bounds = array<i64: 512, 128>}]} {
    %c0 = arith.constant 0 : index
    %c0_0 = arith.constant 0 : index
    %0 = vector.load %arg1[%c0, %c0_0] : memref<512x128xf32, #tpu.memory_space<vmem>>, vector<512x128xf32>
    %c0_1 = arith.constant 0 : index
    %c0_2 = arith.constant 0 : index
    %1 = vector.load %arg2[%c0_1, %c0_2] : memref<128x128xf32, #tpu.memory_space<vmem>>, vector<128x128xf32>
    %cst = arith.constant dense<0.000000e+00> : vector<512x128xf32>
    %2 = tpu.matmul %0, %1, %cst {dimension_numbers = #tpu.dot_dimension_numbers<[1], [0], [0], [1], [0, 0, 1, 1], [], []>} : vector<512x128xf32>, vector<128x128xf32>, vector<512x128xf32> -> vector<512x128xf32>
    %c0_3 = arith.constant 0 : index
    %c0_4 = arith.constant 0 : index
    %3 = vector.load %arg3[%c0_3, %c0_4] : memref<1x128xf32, #tpu.memory_space<vmem>>, vector<1x128xf32>
    %4 = vector.broadcast %3 : vector<1x128xf32> to vector<512x128xf32>
    %5 = arith.addf %2, %4 : vector<512x128xf32>
    %cst_5 = arith.constant 0.000000e+00 : f32
    %6 = vector.broadcast %cst_5 : f32 to vector<512x128xf32>
    %7 = arith.maximumf %5, %6 : vector<512x128xf32>
    %8 = arith.addf %0, %7 : vector<512x128xf32>
    %c0_6 = arith.constant 0 : index
    %c0_7 = arith.constant 0 : index
    %9 = vector.load %arg4[%c0_6, %c0_7] : memref<512x128xf32, #tpu.memory_space<vmem>>, vector<512x128xf32>
    tpu.vector_store %arg4[%c0_6, %c0_7], %8 {strides = array<i32>} : memref<512x128xf32, #tpu.memory_space<vmem>>, vector<512x128xf32>,
    return
  }
  func.func @transform_0(%arg0: i32) -> (i32, i32) {
    %c0_i32 = arith.constant 0 : i32
    %c0_i32_0 = arith.constant 0 : i32
    return %arg0, %c0_i32 : i32, i32
  }
  func.func @transform_1(%arg0: i32) -> (i32, i32) {
    %c0_i32 = arith.constant 0 : i32
    %c0_i32_0 = arith.constant 0 : i32
    %c0_i32_1 = arith.constant 0 : i32
    return %c0_i32, %c0_i32_0 : i32, i32
  }
  func.func @transform_2(%arg0: i32) -> (i32, i32) {
    %c0_i32 = arith.constant 0 : i32
    %c0_i32_0 = arith.constant 0 : i32
    %c0_i32_1 = arith.constant 0 : i32
    return %c0_i32, %c0_i32_0 : i32, i32
  }
  func.func @transform_3(%arg0: i32) -> (i32, i32) {
    %c0_i32 = arith.constant 0 : i32
    %c0_i32_0 = arith.constant 0 : i32
    return %arg0, %c0_i32 : i32, i32
  }
}

</mosaic_0001>

<bundles_post_ra>
// kernel: tpu_custom_call.1
= control target key start
LH: loop header
LB: loop body
LE: loop exit
PB: predicated region body
PF: predicated region fallthrough
CT: control target
= control target key end

     0   :  { %8 = vsyncpa [#allocation3], 0  ;;  %s1052_s0 = inlined_call_operand.hbm [shape: f32[512,128], index: 0, kind: input, shape index: {}]   ;;  %s1053_s1 = inlined_call_operand.hbm [shape: f32[128,128], index: 1, kind: input, shape index: {}]   ;;  %s1054_s2 = inlined_call_operand.vmem [shape: f32[1,128], index: 2, kind: input, shape index: {}]   ;;  %s1055_s3 = inlined_call_operand.hbm [shape: f32[512,128], index: 3, kind: output, shape index: {}]  }
   0x1   :  { %9 = vsyncpa [#allocation6], 0 }
   0x2   :  { %10 = vsyncpa [#allocation4], 0  ;;  %s15_s14 = sshll.u32 %s1052_s0, 4  ;;  %s684_s15 = smov [#allocation2]   ;;  %s16_s14 = int_to_ptr.hbm [resolvable:$true] %s15_s14 }
   0x3   :  { %s17_s16 = sshll.u32 %s684_s15, 4  ;;  %s28_s19 = sshll.u32 %s1053_s1, 4  ;;  %s18_s16 = int_to_ptr.vmem [resolvable:$true] %s17_s16  ;;  %s29_s19 = int_to_ptr.hbm [resolvable:$true] %s28_s19 }
   0x4   :  { %s685_s20 = smov 128   ;;  %s686_s21 = smov 8  }
   0x5   :  { %23 = dma.hbm_to_vmem [thread:$0]  %s16_s14, 8192, %s18_s16, [#allocation3], %s685_s20, %s685_s20, %s686_s21  }
   0x6   :  { %s687_s22 = smov [#allocation5]  }
   0x7   :  { %s30_s23 = sshll.u32 %s687_s22, 4  ;;  %s31_s23 = int_to_ptr.vmem [resolvable:$true] %s30_s23 }
   0x8   :  { %36 = dma.hbm_to_vmem [thread:$0]  %s29_s19, 2048, %s31_s23, [#allocation6], %s685_s20, %s685_s20, %s686_s21  }
   0x9   :  { %678 = dma.done.wait [#allocation3], 8192  }
   0xa   :  { %679 = vsyncadd [#allocation3], 4294959104 }
   0xb   :  { %680 = dma.done.wait [#allocation6], 2048  }
   0xc   :  { %681 = vsyncadd [#allocation6], 4294965248  ;;  %v126_v0 = vld [vmem:[#allocation5 + $0x78] sm:$0xff]  ;;  %v125_v1 = vld [vmem:[#allocation5 + $0x70] sm:$0xff]  ;;  %s538_s27 = sshll.u32 %s1055_s3, 4  ;;  %s539_s27 = int_to_ptr.hbm [resolvable:$true] %s538_s27 }
   0xd   :  { %553 = vmatpush.msra.mxu2 %v126_v0  ;;  %554 = vmatpush.msra.mxu3 %v126_v0  ;;  %v124_v2 = vld [vmem:[#allocation5 + $0x68] sm:$0xff]  ;;  %v123_v3 = vld [vmem:[#allocation5 + $0x60] sm:$0xff]  ;;  %v122_v4 = vld [vmem:[#allocation5 + $0x58] sm:$0xff] }
   0xe   :  { %131 = vmatpush.msra.mxu0 %v126_v0  ;;  %552 = vmatpush.msra.mxu1 %v126_v0  ;;  %v121_v5 = vld [vmem:[#allocation5 + $0x50] sm:$0xff]  ;;  %v120_v6 = vld [vmem:[#allocation5 + $0x48] sm:$0xff]  ;;  %v119_v7 = vld [vmem:[#allocation5 + $0x40] sm:$0xff] }
   0xf   :  { %556 = vmatpush.msra.mxu2 %v125_v1  ;;  %557 = vmatpush.msra.mxu3 %v125_v1  ;;  %v118_v8 = vld [vmem:[#allocation5 + $0x38] sm:$0xff]  ;;  %v117_v9 = vld [vmem:[#allocation5 + $0x30] sm:$0xff]  ;;  %v116_v10 = vld [vmem:[#allocation5 + $0x28] sm:$0xff] }
  0x10   :  { %132 = vmatpush.msra.mxu0 %v125_v1  ;;  %555 = vmatpush.msra.mxu1 %v125_v1  ;;  %v115_v11 = vld [vmem:[#allocation5 + $0x20] sm:$0xff]  ;;  %v114_v12 = vld [vmem:[#allocation5 + $0x18] sm:$0xff]  ;;  %v113_v13 = vld [vmem:[#allocation5 + $0x10] sm:$0xff] }
  0x11   :  { %559 = vmatpush.msra.mxu2 %v124_v2  ;;  %560 = vmatpush.msra.mxu3 %v124_v2  ;;  %v112_v14 = vld [vmem:[#allocation5 + $0x8] sm:$0xff]  ;;  %v111_v15 = vld [vmem:[#allocation5] sm:$0xff]  ;;  %v745_v24 = vld [vmem:[#allocation2 + $0x110] sm:$0xff] }
  0x12   :  { %133 = vmatpush.msra.mxu0 %v124_v2  ;;  %558 = vmatpush.msra.mxu1 %v124_v2  ;;  %v721_v16 = vld [vmem:[#allocation2 + $0x100] sm:$0xff]  ;;  %v733_v20 = vld [vmem:[#allocation2 + $0x108] sm:$0xff]  ;;  %v747_v25 = vld [vmem:[#allocation2 + $0x190] sm:$0xff] }
  0x13   :  { %562 = vmatpush.msra.mxu2 %v123_v3  ;;  %563 = vmatpush.msra.mxu3 %v123_v3  ;;  %v723_v17 = vld [vmem:[#allocation2 + $0x180] sm:$0xff]  ;;  %v735_v21 = vld [vmem:[#allocation2 + $0x188] sm:$0xff]  ;;  %v749_v26 = vld [vmem:[#allocation2 + $0x10] sm:$0xff] }
  0x14   :  { %134 = vmatpush.msra.mxu0 %v123_v3  ;;  %561 = vmatpush.msra.mxu1 %v123_v3  ;;  %v725_v18 = vld [vmem:[#allocation2] sm:$0xff]  ;;  %v737_v22 = vld [vmem:[#allocation2 + $0x8] sm:$0xff]  ;;  %v751_v27 = vld [vmem:[#allocation2 + $0x90] sm:$0xff] }
  0x15   :  { %565 = vmatpush.msra.mxu2 %v122_v4  ;;  %566 = vmatpush.msra.mxu3 %v122_v4  ;;  %v727_v19 = vld [vmem:[#allocation2 + $0x80] sm:$0xff]  ;;  %v739_v23 = vld [vmem:[#allocation2 + $0x88] sm:$0xff]  ;;  %v757_v28 = vld [vmem:[#allocation2 + $0x118] sm:$0xff] }
  0x16   :  { %135 = vmatpush.msra.mxu0 %v122_v4  ;;  %564 = vmatpush.msra.mxu1 %v122_v4  ;;  %v759_v29 = vld [vmem:[#allocation2 + $0x198] sm:$0xff]  ;;  %v769_v32 = vld [vmem:[#allocation2 + $0x120] sm:$0xff]  ;;  %v781_v36 = vld [vmem:[#allocation2 + $0x128] sm:$0xff] }
  0x17   :  { %568 = vmatpush.msra.mxu2 %v121_v5  ;;  %569 = vmatpush.msra.mxu3 %v121_v5  ;;  %v761_v30 = vld [vmem:[#allocation2 + $0x18] sm:$0xff]  ;;  %v771_v33 = vld [vmem:[#allocation2 + $0x1a0] sm:$0xff]  ;;  %v783_v37 = vld [vmem:[#allocation2 + $0x1a8] sm:$0xff] }
  0x18   :  { %136 = vmatpush.msra.mxu0 %v121_v5  ;;  %567 = vmatpush.msra.mxu1 %v121_v5  ;;  %v763_v31 = vld [vmem:[#allocation2 + $0x98] sm:$0xff]  ;;  %v773_v34 = vld [vmem:[#allocation2 + $0x20] sm:$0xff]  ;;  %v785_v38 = vld [vmem:[#allocation2 + $0x28] sm:$0xff] }
  0x19   :  { %571 = vmatpush.msra.mxu2 %v120_v6  ;;  %572 = vmatpush.msra.mxu3 %v120_v6  ;;  %v775_v35 = vld [vmem:[#allocation2 + $0xa0] sm:$0xff]  ;;  %v787_v39 = vld [vmem:[#allocation2 + $0xa8] sm:$0xff]  ;;  %v793_v40 = vld [vmem:[#allocation2 + $0x130] sm:$0xff] }
  0x1a   :  { %137 = vmatpush.msra.mxu0 %v120_v6  ;;  %570 = vmatpush.msra.mxu1 %v120_v6  ;;  %v795_v41 = vld [vmem:[#allocation2 + $0x1b0] sm:$0xff]  ;;  %v805_v44 = vld [vmem:[#allocation2 + $0x138] sm:$0xff]  ;;  %v817_v48 = vld [vmem:[#allocation2 + $0x140] sm:$0xff] }
  0x1b   :  { %574 = vmatpush.msra.mxu2 %v119_v7  ;;  %575 = vmatpush.msra.mxu3 %v119_v7  ;;  %v797_v42 = vld [vmem:[#allocation2 + $0x30] sm:$0xff]  ;;  %v807_v45 = vld [vmem:[#allocation2 + $0x1b8] sm:$0xff]  ;;  %v819_v49 = vld [vmem:[#allocation2 + $0x1c0] sm:$0xff] }
  0x1c   :  { %138 = vmatpush.msra.mxu0 %v119_v7  ;;  %573 = vmatpush.msra.mxu1 %v119_v7  ;;  %v799_v43 = vld [vmem:[#allocation2 + $0xb0] sm:$0xff]  ;;  %v809_v46 = vld [vmem:[#allocation2 + $0x38] sm:$0xff]  ;;  %v821_v50 = vld [vmem:[#allocation2 + $0x40] sm:$0xff] }
  0x1d   :  { %577 = vmatpush.msra.mxu2 %v118_v8  ;;  %578 = vmatpush.msra.mxu3 %v118_v8  ;;  %v811_v47 = vld [vmem:[#allocation2 + $0xb8] sm:$0xff]  ;;  %v823_v51 = vld [vmem:[#allocation2 + $0xc0] sm:$0xff]  ;;  %v829_v52 = vld [vmem:[#allocation2 + $0x148] sm:$0xff] }
  0x1e   :  { %139 = vmatpush.msra.mxu0 %v118_v8  ;;  %576 = vmatpush.msra.mxu1 %v118_v8  ;;  %v831_v53 = vld [vmem:[#allocation2 + $0x1c8] sm:$0xff]  ;;  %v841_v56 = vld [vmem:[#allocation2 + $0x150] sm:$0xff]  ;;  %v853_v60 = vld [vmem:[#allocation2 + $0x158] sm:$0xff] }
  0x1f   :  { %580 = vmatpush.msra.mxu2 %v117_v9  ;;  %581 = vmatpush.msra.mxu3 %v117_v9  ;;  %v833_v54 = vld [vmem:[#allocation2 + $0x48] sm:$0xff]  ;;  %v843_v57 = vld [vmem:[#allocation2 + $0x1d0] sm:$0xff]  ;;  %v855_v61 = vld [vmem:[#allocation2 + $0x1d8] sm:$0xff] }
  0x20   :  { %140 = vmatpush.msra.mxu0 %v117_v9  ;;  %579 = vmatpush.msra.mxu1 %v117_v9  ;;  %v835_v55 = vld [vmem:[#allocation2 + $0xc8] sm:$0xff]  ;;  %v845_v58 = vld [vmem:[#allocation2 + $0x50] sm:$0xff]  ;;  %v857_v62 = vld [vmem:[#allocation2 + $0x58] sm:$0xff] }
  0x21   :  { %583 = vmatpush.msra.mxu2 %v116_v10  ;;  %584 = vmatpush.msra.mxu3 %v116_v10  ;;  %v847_v59 = vld [vmem:[#allocation2 + $0xd0] sm:$0xff]  ;;  %v859_v63 = vld [vmem:[#allocation2 + $0xd8] sm:$0xff]  ;;  %v865_v0 = vld [vmem:[#allocation2 + $0x160] sm:$0xff] }
  0x22   :  { %141 = vmatpush.msra.mxu0 %v116_v10  ;;  %582 = vmatpush.msra.mxu1 %v116_v10  ;;  %1072 = vst [vmem:[#allocation11_spill] sm:$0xff] %v865_v0  ;;  %v867_v1 = vld [vmem:[#allocation2 + $0x1e0] sm:$0xff]  ;;  %v877_v4 = vld [vmem:[#allocation2 + $0x168] sm:$0xff]  ;;  %v889_v8 = vld [vmem:[#allocation2 + $0x170] sm:$0xff] }
  0x23   :  { %586 = vmatpush.msra.mxu2 %v115_v11  ;;  %587 = vmatpush.msra.mxu3 %v115_v11  ;;  %1073 = vst [vmem:[#allocation12_spill] sm:$0xff] %v867_v1  ;;  %v869_v2 = vld [vmem:[#allocation2 + $0x60] sm:$0xff]  ;;  %v879_v5 = vld [vmem:[#allocation2 + $0x1e8] sm:$0xff]  ;;  %v891_v9 = vld [vmem:[#allocation2 + $0x1f0] sm:$0xff] }
  0x24   :  { %142 = vmatpush.msra.mxu0 %v115_v11  ;;  %585 = vmatpush.msra.mxu1 %v115_v11  ;;  %1074 = vst [vmem:[#allocation13_spill] sm:$0xff] %v869_v2  ;;  %v871_v3 = vld [vmem:[#allocation2 + $0xe0] sm:$0xff]  ;;  %v881_v6 = vld [vmem:[#allocation2 + $0x68] sm:$0xff]  ;;  %v893_v10 = vld [vmem:[#allocation2 + $0x70] sm:$0xff] }
  0x25   :  { %589 = vmatpush.msra.mxu2 %v114_v12  ;;  %590 = vmatpush.msra.mxu3 %v114_v12  ;;  %1075 = vst [vmem:[#allocation14_spill] sm:$0xff] %v871_v3  ;;  %v883_v7 = vld [vmem:[#allocation2 + $0xe8] sm:$0xff]  ;;  %v895_v11 = vld [vmem:[#allocation2 + $0xf0] sm:$0xff] }
  0x26   :  { %143 = vmatpush.msra.mxu0 %v114_v12  ;;  %588 = vmatpush.msra.mxu1 %v114_v12  ;;  %1076 = vst [vmem:[#allocation15_spill] sm:$0xff] %v877_v4  ;;  %v901_v12 = vld [vmem:[#allocation2 + $0x178] sm:$0xff] }
  0x27   :  { %592 = vmatpush.msra.mxu2 %v113_v13  ;;  %593 = vmatpush.msra.mxu3 %v113_v13  ;;  %1077 = vst [vmem:[#allocation16_spill] sm:$0xff] %v879_v5 }
  0x28   :  { %144 = vmatpush.msra.mxu0 %v113_v13  ;;  %591 = vmatpush.msra.mxu1 %v113_v13  ;;  %1078 = vst [vmem:[#allocation17_spill] sm:$0xff] %v881_v6  ;;  %v903_v13 = vld [vmem:[#allocation2 + $0x1f8] sm:$0xff] }
  0x29   :  { %595 = vmatpush.msra.mxu2 %v112_v14  ;;  %596 = vmatpush.msra.mxu3 %v112_v14  ;;  %1079 = vst [vmem:[#allocation18_spill] sm:$0xff] %v883_v7 }
  0x2a   :  { %145 = vmatpush.msra.mxu0 %v112_v14  ;;  %594 = vmatpush.msra.mxu1 %v112_v14  ;;  %1080 = vst [vmem:[#allocation19_spill] sm:$0xff] %v889_v8  ;;  %v905_v14 = vld [vmem:[#allocation2 + $0x78] sm:$0xff] }
  0x2b   :  { %598 = vmatpush.msra.mxu2 %v111_v15  ;;  %599 = vmatpush.msra.mxu3 %v111_v15  ;;  %1081 = vst [vmem:[#allocation20_spill] sm:$0xff] %v891_v9 }
  0x2c   :  { %243 = vmatmul.f32.vlgmr.msra.gmra.mxu2 %v721_v16  ;;  %291 = vmatmul.f32.vlgmr.msra.gmra.mxu3 %v723_v17  ;;  %1082 = vst [vmem:[#allocation21_spill] sm:$0xff] %v893_v10 }
  0x2d   :  { %146 = vmatpush.msra.mxu0 %v111_v15  ;;  %597 = vmatpush.msra.mxu1 %v111_v15  ;;  %1083 = vst [vmem:[#allocation22_spill] sm:$0xff] %v895_v11  ;;  %v907_v15 = vld [vmem:[#allocation2 + $0xf8] sm:$0xff] }
  0x2e   :  { %147 = vmatmul.f32.vlgmr.msra.gmra.mxu0 %v725_v18  ;;  %195 = vmatmul.f32.vlgmr.msra.gmra.mxu1 %v727_v19  ;;  %1084 = vst [vmem:[#allocation23_spill] sm:$0xff] %v901_v12 }
  0x2f   :  { %1085 = vst [vmem:[#allocation24_spill] sm:$0xff] %v903_v13 }
  0x30   :  { %1086 = vst [vmem:[#allocation25_spill] sm:$0xff] %v905_v14 }
  0x31   :  { %1087 = vst [vmem:[#allocation26_spill] sm:$0xff] %v907_v15 }
  0x34   :  { %246 = vmatmul.f32.gmra.mxu2 %v733_v20  ;;  %294 = vmatmul.f32.gmra.mxu3 %v735_v21 }
  0x36   :  { %150 = vmatmul.f32.gmra.mxu0 %v737_v22  ;;  %198 = vmatmul.f32.gmra.mxu1 %v739_v23 }
  0x3c   :  { %249 = vmatmul.f32.gmra.mxu2 %v745_v24  ;;  %297 = vmatmul.f32.gmra.mxu3 %v747_v25 }
  0x3e   :  { %153 = vmatmul.f32.gmra.mxu0 %v749_v26  ;;  %201 = vmatmul.f32.gmra.mxu1 %v751_v27 }
  0x44   :  { %252 = vmatmul.f32.gmra.mxu2 %v757_v28  ;;  %300 = vmatmul.f32.gmra.mxu3 %v759_v29 }
  0x46   :  { %156 = vmatmul.f32.gmra.mxu0 %v761_v30  ;;  %204 = vmatmul.f32.gmra.mxu1 %v763_v31 }
  0x4c   :  { %255 = vmatmul.f32.gmra.mxu2 %v769_v32  ;;  %303 = vmatmul.f32.gmra.mxu3 %v771_v33 }
  0x4e   :  { %159 = vmatmul.f32.gmra.mxu0 %v773_v34  ;;  %207 = vmatmul.f32.gmra.mxu1 %v775_v35 }
  0x54   :  { %258 = vmatmul.f32.gmra.mxu2 %v781_v36  ;;  %306 = vmatmul.f32.gmra.mxu3 %v783_v37 }
  0x56   :  { %162 = vmatmul.f32.gmra.mxu0 %v785_v38  ;;  %210 = vmatmul.f32.gmra.mxu1 %v787_v39 }
  0x5c   :  { %261 = vmatmul.f32.gmra.mxu2 %v793_v40  ;;  %309 = vmatmul.f32.gmra.mxu3 %v795_v41 }
  0x5e   :  { %165 = vmatmul.f32.gmra.mxu0 %v797_v42  ;;  %213 = vmatmul.f32.gmra.mxu1 %v799_v43 }
  0x64   :  { %264 = vmatmul.f32.gmra.mxu2 %v805_v44  ;;  %312 = vmatmul.f32.gmra.mxu3 %v807_v45 }
  0x66   :  { %168 = vmatmul.f32.gmra.mxu0 %v809_v46  ;;  %216 = vmatmul.f32.gmra.mxu1 %v811_v47 }
  0x6c   :  { %267 = vmatmul.f32.gmra.mxu2 %v817_v48  ;;  %315 = vmatmul.f32.gmra.mxu3 %v819_v49 }
  0x6e   :  { %171 = vmatmul.f32.gmra.mxu0 %v821_v50  ;;  %219 = vmatmul.f32.gmra.mxu1 %v823_v51 }
  0x74   :  { %270 = vmatmul.f32.gmra.mxu2 %v829_v52  ;;  %318 = vmatmul.f32.gmra.mxu3 %v831_v53 }
  0x76   :  { %174 = vmatmul.f32.gmra.mxu0 %v833_v54  ;;  %222 = vmatmul.f32.gmra.mxu1 %v835_v55 }
  0x7c   :  { %273 = vmatmul.f32.gmra.mxu2 %v841_v56  ;;  %321 = vmatmul.f32.gmra.mxu3 %v843_v57 }
  0x7e   :  { %177 = vmatmul.f32.gmra.mxu0 %v845_v58  ;;  %225 = vmatmul.f32.gmra.mxu1 %v847_v59 }
  0x84   :  { %276 = vmatmul.f32.gmra.mxu2 %v853_v60  ;;  %324 = vmatmul.f32.gmra.mxu3 %v855_v61 }
  0x86   :  { %180 = vmatmul.f32.gmra.mxu0 %v857_v62  ;;  %228 = vmatmul.f32.gmra.mxu1 %v859_v63 }
  0x8c   :  { %279 = vmatmul.f32.gmra.mxu2 %v865_v0  ;;  %327 = vmatmul.f32.gmra.mxu3 %v867_v1 }
  0x8e   :  { %183 = vmatmul.f32.gmra.mxu0 %v869_v2  ;;  %231 = vmatmul.f32.gmra.mxu1 %v871_v3 }
  0x94   :  { %282 = vmatmul.f32.gmra.mxu2 %v877_v4  ;;  %330 = vmatmul.f32.gmra.mxu3 %v879_v5 }
  0x96   :  { %186 = vmatmul.f32.gmra.mxu0 %v881_v6  ;;  %234 = vmatmul.f32.gmra.mxu1 %v883_v7 }
  0x9c   :  { %285 = vmatmul.f32.gmra.mxu2 %v889_v8  ;;  %333 = vmatmul.f32.gmra.mxu3 %v891_v9  ;;  %v916_v9 = vld [vmem:[%s1054_s2] ss:$0 sm:$0xff]  ;;  %s688_s2 = smov [#allocation7]  }
  0x9d   :  { %s536_s24 = sshll.u32 %s688_s2, 4  ;;  %s537_s24 = int_to_ptr.vmem [resolvable:$true] %s536_s24 }
  0x9e   :  { %189 = vmatmul.f32.gmra.mxu0 %v893_v10  ;;  %237 = vmatmul.f32.gmra.mxu1 %v895_v11 }
  0xa4   :  { %288 = vmatmul.f32.gmra.mxu2 %v901_v12  ;;  %336 = vmatmul.f32.gmra.mxu3 %v903_v13 }
  0xa6   :  { %192 = vmatmul.f32.gmra.mxu0 %v905_v14  ;;  %240 = vmatmul.f32.gmra.mxu1 %v907_v15 }
  0xab   :  { %v148_v8 = vpop.f32.mrf.mxu0  ;;  %v196_v11 = vpop.f32.mrf.mxu1 }
  0xac   :  { %v149_v10 = vadd.f32 %v916_v9, %v148_v8  ;;  %v197_v5 = vadd.f32 %v916_v9, %v196_v11 }
  0xae   :  { %v340_v4 = vmax.f32 %v149_v10, 0.0  ;;  %v356_v7 = vmax.f32 %v197_v5, 0.0 }
  0xaf   :  { %v244_v12 = vpop.f32.mrf.mxu2  ;;  %v292_v6 = vpop.f32.mrf.mxu3 }
  0xb0   :  { %v404_v13 = vadd.f32 %v340_v4, %v725_v18  ;;  %v420_v14 = vadd.f32 %v356_v7, %v727_v19  ;;  %v245_v15 = vadd.f32 %v916_v9, %v244_v12  ;;  %v293_v1 = vadd.f32 %v916_v9, %v292_v6 }
  0xb2   :  { %468 = vst [vmem:[#allocation7] sm:$0xff] %v404_v13  ;;  %v372_v0 = vmax.f32 %v245_v15, 0.0  ;;  %v388_v3 = vmax.f32 %v293_v1, 0.0 }
  0xb3   :  { %484 = vst [vmem:[#allocation7 + $0x80] sm:$0xff] %v420_v14  ;;  %v151_v2 = vpop.f32.mrf.mxu0  ;;  %v199_v8 = vpop.f32.mrf.mxu1 }
  0xb4   :  { %v436_v11 = vadd.f32 %v372_v0, %v721_v16  ;;  %v452_v5 = vadd.f32 %v388_v3, %v723_v17  ;;  %v152_v10 = vadd.f32 %v916_v9, %v151_v2  ;;  %v200_v18 = vadd.f32 %v916_v9, %v199_v8 }
  0xb6   :  { %500 = vst [vmem:[#allocation7 + $0x100] sm:$0xff] %v436_v11  ;;  %v341_v19 = vmax.f32 %v152_v10, 0.0  ;;  %v357_v4 = vmax.f32 %v200_v18, 0.0 }
  0xb7   :  { %516 = vst [vmem:[#allocation7 + $0x180] sm:$0xff] %v452_v5  ;;  %v247_v7 = vpop.f32.mrf.mxu2  ;;  %v295_v6 = vpop.f32.mrf.mxu3 }
  0xb8   :  { %v405_v12 = vadd.f32 %v341_v19, %v737_v22  ;;  %v421_v1 = vadd.f32 %v357_v4, %v739_v23  ;;  %v248_v13 = vadd.f32 %v916_v9, %v247_v7  ;;  %v296_v16 = vadd.f32 %v916_v9, %v295_v6 }
  0xba   :  { %469 = vst [vmem:[#allocation7 + $0x8] sm:$0xff] %v405_v12  ;;  %v373_v17 = vmax.f32 %v248_v13, 0.0  ;;  %v389_v0 = vmax.f32 %v296_v16, 0.0 }
  0xbb   :  { %485 = vst [vmem:[#allocation7 + $0x88] sm:$0xff] %v421_v1  ;;  %v154_v2 = vpop.f32.mrf.mxu0  ;;  %v202_v3 = vpop.f32.mrf.mxu1 }
  0xbc   :  { %v437_v14 = vadd.f32 %v373_v17, %v733_v20  ;;  %v453_v15 = vadd.f32 %v389_v0, %v735_v21  ;;  %v155_v8 = vadd.f32 %v916_v9, %v154_v2  ;;  %v203_v22 = vadd.f32 %v916_v9, %v202_v3 }
  0xbe   :  { %501 = vst [vmem:[#allocation7 + $0x108] sm:$0xff] %v437_v14  ;;  %v342_v23 = vmax.f32 %v155_v8, 0.0  ;;  %v358_v11 = vmax.f32 %v203_v22, 0.0 }
  0xbf   :  { %517 = vst [vmem:[#allocation7 + $0x188] sm:$0xff] %v453_v15  ;;  %v250_v5 = vpop.f32.mrf.mxu2  ;;  %v298_v10 = vpop.f32.mrf.mxu3 }
  0xc0   :  { %v406_v18 = vadd.f32 %v342_v23, %v749_v26  ;;  %v422_v19 = vadd.f32 %v358_v11, %v751_v27  ;;  %v251_v4 = vadd.f32 %v916_v9, %v250_v5  ;;  %v299_v20 = vadd.f32 %v916_v9, %v298_v10 }
  0xc2   :  { %470 = vst [vmem:[#allocation7 + $0x10] sm:$0xff] %v406_v18  ;;  %v374_v21 = vmax.f32 %v251_v4, 0.0  ;;  %v390_v7 = vmax.f32 %v299_v20, 0.0 }
  0xc3   :  { %486 = vst [vmem:[#allocation7 + $0x90] sm:$0xff] %v422_v19  ;;  %v157_v6 = vpop.f32.mrf.mxu0  ;;  %v205_v12 = vpop.f32.mrf.mxu1 }
  0xc4   :  { %v438_v1 = vadd.f32 %v374_v21, %v745_v24  ;;  %v454_v13 = vadd.f32 %v390_v7, %v747_v25  ;;  %v158_v16 = vadd.f32 %v916_v9, %v157_v6  ;;  %v206_v26 = vadd.f32 %v916_v9, %v205_v12 }
  0xc6   :  { %502 = vst [vmem:[#allocation7 + $0x110] sm:$0xff] %v438_v1  ;;  %v343_v27 = vmax.f32 %v158_v16, 0.0  ;;  %v359_v17 = vmax.f32 %v206_v26, 0.0 }
  0xc7   :  { %518 = vst [vmem:[#allocation7 + $0x190] sm:$0xff] %v454_v13  ;;  %v253_v0 = vpop.f32.mrf.mxu2  ;;  %v301_v2 = vpop.f32.mrf.mxu3 }
  0xc8   :  { %v407_v3 = vadd.f32 %v343_v27, %v761_v30  ;;  %v423_v14 = vadd.f32 %v359_v17, %v763_v31  ;;  %v254_v15 = vadd.f32 %v916_v9, %v253_v0  ;;  %v302_v24 = vadd.f32 %v916_v9, %v301_v2 }
  0xca   :  { %471 = vst [vmem:[#allocation7 + $0x18] sm:$0xff] %v407_v3  ;;  %v375_v25 = vmax.f32 %v254_v15, 0.0  ;;  %v391_v8 = vmax.f32 %v302_v24, 0.0 }
  0xcb   :  { %487 = vst [vmem:[#allocation7 + $0x98] sm:$0xff] %v423_v14  ;;  %v160_v22 = vpop.f32.mrf.mxu0  ;;  %v208_v23 = vpop.f32.mrf.mxu1 }
  0xcc   :  { %v439_v11 = vadd.f32 %v375_v25, %v757_v28  ;;  %v455_v5 = vadd.f32 %v391_v8, %v759_v29  ;;  %v161_v10 = vadd.f32 %v916_v9, %v160_v22  ;;  %v209_v30 = vadd.f32 %v916_v9, %v208_v23 }
  0xce   :  { %503 = vst [vmem:[#allocation7 + $0x118] sm:$0xff] %v439_v11  ;;  %v344_v31 = vmax.f32 %v161_v10, 0.0  ;;  %v360_v18 = vmax.f32 %v209_v30, 0.0 }
  0xcf   :  { %519 = vst [vmem:[#allocation7 + $0x198] sm:$0xff] %v455_v5  ;;  %v256_v19 = vpop.f32.mrf.mxu2  ;;  %v304_v4 = vpop.f32.mrf.mxu3 }
  0xd0   :  { %v408_v20 = vadd.f32 %v344_v31, %v773_v34  ;;  %v424_v21 = vadd.f32 %v360_v18, %v775_v35  ;;  %v257_v7 = vadd.f32 %v916_v9, %v256_v19  ;;  %v305_v28 = vadd.f32 %v916_v9, %v304_v4 }
  0xd2   :  { %472 = vst [vmem:[#allocation7 + $0x20] sm:$0xff] %v408_v20  ;;  %v376_v29 = vmax.f32 %v257_v7, 0.0  ;;  %v392_v6 = vmax.f32 %v305_v28, 0.0 }
  0xd3   :  { %488 = vst [vmem:[#allocation7 + $0xa0] sm:$0xff] %v424_v21  ;;  %v163_v12 = vpop.f32.mrf.mxu0  ;;  %v211_v1 = vpop.f32.mrf.mxu1 }
  0xd4   :  { %v440_v13 = vadd.f32 %v376_v29, %v769_v32  ;;  %v456_v16 = vadd.f32 %v392_v6, %v771_v33  ;;  %v164_v26 = vadd.f32 %v916_v9, %v163_v12  ;;  %v212_v34 = vadd.f32 %v916_v9, %v211_v1 }
  0xd6   :  { %504 = vst [vmem:[#allocation7 + $0x120] sm:$0xff] %v440_v13  ;;  %v345_v35 = vmax.f32 %v164_v26, 0.0  ;;  %v361_v27 = vmax.f32 %v212_v34, 0.0 }
  0xd7   :  { %520 = vst [vmem:[#allocation7 + $0x1a0] sm:$0xff] %v456_v16  ;;  %v259_v17 = vpop.f32.mrf.mxu2  ;;  %v307_v0 = vpop.f32.mrf.mxu3 }
  0xd8   :  { %v409_v2 = vadd.f32 %v345_v35, %v785_v38  ;;  %v425_v3 = vadd.f32 %v361_v27, %v787_v39  ;;  %v260_v14 = vadd.f32 %v916_v9, %v259_v17  ;;  %v308_v32 = vadd.f32 %v916_v9, %v307_v0 }
  0xda   :  { %473 = vst [vmem:[#allocation7 + $0x28] sm:$0xff] %v409_v2  ;;  %v377_v33 = vmax.f32 %v260_v14, 0.0  ;;  %v393_v15 = vmax.f32 %v308_v32, 0.0 }
  0xdb   :  { %489 = vst [vmem:[#allocation7 + $0xa8] sm:$0xff] %v425_v3  ;;  %v166_v24 = vpop.f32.mrf.mxu0  ;;  %v214_v25 = vpop.f32.mrf.mxu1 }
  0xdc   :  { %v441_v8 = vadd.f32 %v377_v33, %v781_v36  ;;  %v457_v22 = vadd.f32 %v393_v15, %v783_v37  ;;  %v167_v23 = vadd.f32 %v916_v9, %v166_v24  ;;  %v215_v38 = vadd.f32 %v916_v9, %v214_v25 }
  0xde   :  { %505 = vst [vmem:[#allocation7 + $0x128] sm:$0xff] %v441_v8  ;;  %v346_v39 = vmax.f32 %v167_v23, 0.0  ;;  %v362_v11 = vmax.f32 %v215_v38, 0.0 }
  0xdf   :  { %521 = vst [vmem:[#allocation7 + $0x1a8] sm:$0xff] %v457_v22  ;;  %v262_v5 = vpop.f32.mrf.mxu2  ;;  %v310_v10 = vpop.f32.mrf.mxu3 }
  0xe0   :  { %v410_v30 = vadd.f32 %v346_v39, %v797_v42  ;;  %v426_v31 = vadd.f32 %v362_v11, %v799_v43  ;;  %v263_v18 = vadd.f32 %v916_v9, %v262_v5  ;;  %v311_v36 = vadd.f32 %v916_v9, %v310_v10 }
  0xe2   :  { %474 = vst [vmem:[#allocation7 + $0x30] sm:$0xff] %v410_v30  ;;  %v378_v37 = vmax.f32 %v263_v18, 0.0  ;;  %v394_v19 = vmax.f32 %v311_v36, 0.0 }
  0xe3   :  { %490 = vst [vmem:[#allocation7 + $0xb0] sm:$0xff] %v426_v31  ;;  %v169_v4 = vpop.f32.mrf.mxu0  ;;  %v217_v20 = vpop.f32.mrf.mxu1 }
  0xe4   :  { %v442_v21 = vadd.f32 %v378_v37, %v793_v40  ;;  %v458_v7 = vadd.f32 %v394_v19, %v795_v41  ;;  %v170_v28 = vadd.f32 %v916_v9, %v169_v4  ;;  %v218_v42 = vadd.f32 %v916_v9, %v217_v20 }
  0xe6   :  { %506 = vst [vmem:[#allocation7 + $0x130] sm:$0xff] %v442_v21  ;;  %v347_v43 = vmax.f32 %v170_v28, 0.0  ;;  %v363_v29 = vmax.f32 %v218_v42, 0.0 }
  0xe7   :  { %522 = vst [vmem:[#allocation7 + $0x1b0] sm:$0xff] %v458_v7  ;;  %v265_v6 = vpop.f32.mrf.mxu2  ;;  %v313_v12 = vpop.f32.mrf.mxu3 }
  0xe8   :  { %v411_v1 = vadd.f32 %v347_v43, %v809_v46  ;;  %v427_v13 = vadd.f32 %v363_v29, %v811_v47  ;;  %v266_v16 = vadd.f32 %v916_v9, %v265_v6  ;;  %v314_v40 = vadd.f32 %v916_v9, %v313_v12 }
  0xea   :  { %475 = vst [vmem:[#allocation7 + $0x38] sm:$0xff] %v411_v1  ;;  %v379_v41 = vmax.f32 %v266_v16, 0.0  ;;  %v395_v26 = vmax.f32 %v314_v40, 0.0 }
  0xeb   :  { %491 = vst [vmem:[#allocation7 + $0xb8] sm:$0xff] %v427_v13  ;;  %v172_v34 = vpop.f32.mrf.mxu0  ;;  %v220_v35 = vpop.f32.mrf.mxu1 }
  0xec   :  { %v443_v27 = vadd.f32 %v379_v41, %v805_v44  ;;  %v459_v17 = vadd.f32 %v395_v26, %v807_v45  ;;  %v173_v0 = vadd.f32 %v916_v9, %v172_v34  ;;  %v221_v46 = vadd.f32 %v916_v9, %v220_v35 }
  0xee   :  { %507 = vst [vmem:[#allocation7 + $0x138] sm:$0xff] %v443_v27  ;;  %v348_v47 = vmax.f32 %v173_v0, 0.0  ;;  %v364_v2 = vmax.f32 %v221_v46, 0.0 }
  0xef   :  { %523 = vst [vmem:[#allocation7 + $0x1b8] sm:$0xff] %v459_v17  ;;  %v268_v3 = vpop.f32.mrf.mxu2  ;;  %v316_v14 = vpop.f32.mrf.mxu3 }
  0xf0   :  { %v412_v32 = vadd.f32 %v348_v47, %v821_v50  ;;  %v428_v33 = vadd.f32 %v364_v2, %v823_v51  ;;  %v269_v15 = vadd.f32 %v916_v9, %v268_v3  ;;  %v317_v44 = vadd.f32 %v916_v9, %v316_v14 }
  0xf2   :  { %476 = vst [vmem:[#allocation7 + $0x40] sm:$0xff] %v412_v32  ;;  %v380_v45 = vmax.f32 %v269_v15, 0.0  ;;  %v396_v24 = vmax.f32 %v317_v44, 0.0  ;;  %v1088_v44 = vld [vmem:[#allocation13_spill] sm:$0xff] }
  0xf3   :  { %492 = vst [vmem:[#allocation7 + $0xc0] sm:$0xff] %v428_v33  ;;  %v175_v25 = vpop.f32.mrf.mxu0  ;;  %v223_v8 = vpop.f32.mrf.mxu1 }
  0xf4   :  { %v444_v22 = vadd.f32 %v380_v45, %v817_v48  ;;  %v460_v23 = vadd.f32 %v396_v24, %v819_v49  ;;  %v176_v38 = vadd.f32 %v916_v9, %v175_v25  ;;  %v224_v50 = vadd.f32 %v916_v9, %v223_v8  ;;  %v1089_v24 = vld [vmem:[#allocation14_spill] sm:$0xff] }
  0xf6   :  { %508 = vst [vmem:[#allocation7 + $0x140] sm:$0xff] %v444_v22  ;;  %v349_v51 = vmax.f32 %v176_v38, 0.0  ;;  %v365_v39 = vmax.f32 %v224_v50, 0.0  ;;  %v1090_v50 = vld [vmem:[#allocation11_spill] sm:$0xff] }
  0xf7   :  { %524 = vst [vmem:[#allocation7 + $0x1c0] sm:$0xff] %v460_v23  ;;  %v271_v11 = vpop.f32.mrf.mxu2  ;;  %v319_v5 = vpop.f32.mrf.mxu3 }
  0xf8   :  { %v413_v10 = vadd.f32 %v349_v51, %v833_v54  ;;  %v429_v30 = vadd.f32 %v365_v39, %v835_v55  ;;  %v272_v31 = vadd.f32 %v916_v9, %v271_v11  ;;  %v320_v48 = vadd.f32 %v916_v9, %v319_v5  ;;  %v1091_v39 = vld [vmem:[#allocation12_spill] sm:$0xff] }
  0xfa   :  { %477 = vst [vmem:[#allocation7 + $0x48] sm:$0xff] %v413_v10  ;;  %v381_v49 = vmax.f32 %v272_v31, 0.0  ;;  %v397_v18 = vmax.f32 %v320_v48, 0.0 }
  0xfb   :  { %493 = vst [vmem:[#allocation7 + $0xc8] sm:$0xff] %v429_v30  ;;  %v178_v36 = vpop.f32.mrf.mxu0  ;;  %v226_v37 = vpop.f32.mrf.mxu1 }
  0xfc   :  { %v445_v19 = vadd.f32 %v381_v49, %v829_v52  ;;  %v461_v4 = vadd.f32 %v397_v18, %v831_v53  ;;  %v179_v20 = vadd.f32 %v916_v9, %v178_v36  ;;  %v227_v54 = vadd.f32 %v916_v9, %v226_v37  ;;  %v1092_v18 = vld [vmem:[#allocation17_spill] sm:$0xff]  ;;  %v1093_v37 = vld [vmem:[#allocation18_spill] sm:$0xff] }
  0xfe   :  { %509 = vst [vmem:[#allocation7 + $0x148] sm:$0xff] %v445_v19  ;;  %v350_v55 = vmax.f32 %v179_v20, 0.0  ;;  %v366_v21 = vmax.f32 %v227_v54, 0.0 }
  0xff   :  { %525 = vst [vmem:[#allocation7 + $0x1c8] sm:$0xff] %v461_v4  ;;  %v274_v7 = vpop.f32.mrf.mxu2  ;;  %v322_v28 = vpop.f32.mrf.mxu3 }
 0x100   :  { %v414_v42 = vadd.f32 %v350_v55, %v845_v58  ;;  %v430_v43 = vadd.f32 %v366_v21, %v847_v59  ;;  %v275_v29 = vadd.f32 %v916_v9, %v274_v7  ;;  %v323_v52 = vadd.f32 %v916_v9, %v322_v28  ;;  %v1094_v28 = vld [vmem:[#allocation15_spill] sm:$0xff] }
 0x102   :  { %478 = vst [vmem:[#allocation7 + $0x50] sm:$0xff] %v414_v42  ;;  %v382_v53 = vmax.f32 %v275_v29, 0.0  ;;  %v398_v6 = vmax.f32 %v323_v52, 0.0 }
 0x103   :  { %494 = vst [vmem:[#allocation7 + $0xd0] sm:$0xff] %v430_v43  ;;  %v181_v12 = vpop.f32.mrf.mxu0  ;;  %v229_v1 = vpop.f32.mrf.mxu1  ;;  %v1095_v43 = vld [vmem:[#allocation16_spill] sm:$0xff] }
 0x104   :  { %v446_v13 = vadd.f32 %v382_v53, %v841_v56  ;;  %v462_v16 = vadd.f32 %v398_v6, %v843_v57  ;;  %v182_v40 = vadd.f32 %v916_v9, %v181_v12  ;;  %v230_v58 = vadd.f32 %v916_v9, %v229_v1 }
 0x106   :  { %510 = vst [vmem:[#allocation7 + $0x150] sm:$0xff] %v446_v13  ;;  %v351_v59 = vmax.f32 %v182_v40, 0.0  ;;  %v367_v41 = vmax.f32 %v230_v58, 0.0  ;;  %v1097_v58 = vld [vmem:[#allocation22_spill] sm:$0xff] }
 0x107   :  { %526 = vst [vmem:[#allocation7 + $0x1d0] sm:$0xff] %v462_v16  ;;  %v277_v26 = vpop.f32.mrf.mxu2  ;;  %v325_v34 = vpop.f32.mrf.mxu3  ;;  %v1096_v16 = vld [vmem:[#allocation21_spill] sm:$0xff] }
 0x108   :  { %v415_v35 = vadd.f32 %v351_v59, %v857_v62  ;;  %v431_v27 = vadd.f32 %v367_v41, %v859_v63  ;;  %v278_v17 = vadd.f32 %v916_v9, %v277_v26  ;;  %v326_v56 = vadd.f32 %v916_v9, %v325_v34 }
 0x10a   :  { %479 = vst [vmem:[#allocation7 + $0x58] sm:$0xff] %v415_v35  ;;  %v383_v57 = vmax.f32 %v278_v17, 0.0  ;;  %v399_v0 = vmax.f32 %v326_v56, 0.0  ;;  %v1098_v56 = vld [vmem:[#allocation19_spill] sm:$0xff] }
 0x10b   :  { %495 = vst [vmem:[#allocation7 + $0xd8] sm:$0xff] %v431_v27  ;;  %v184_v46 = vpop.f32.mrf.mxu0  ;;  %v232_v47 = vpop.f32.mrf.mxu1 }
 0x10c   :  { %v447_v2 = vadd.f32 %v383_v57, %v853_v60  ;;  %v463_v3 = vadd.f32 %v399_v0, %v855_v61  ;;  %v185_v14 = vadd.f32 %v916_v9, %v184_v46  ;;  %v233_v62 = vadd.f32 %v916_v9, %v232_v47  ;;  %v1099_v0 = vld [vmem:[#allocation20_spill] sm:$0xff] }
 0x10e   :  { %511 = vst [vmem:[#allocation7 + $0x158] sm:$0xff] %v447_v2  ;;  %v352_v63 = vmax.f32 %v185_v14, 0.0  ;;  %v368_v32 = vmax.f32 %v233_v62, 0.0 }
 0x10f   :  { %527 = vst [vmem:[#allocation7 + $0x1d8] sm:$0xff] %v463_v3  ;;  %v280_v33 = vpop.f32.mrf.mxu2  ;;  %v328_v15 = vpop.f32.mrf.mxu3 }
 0x110   :  { %v416_v45 = vadd.f32 %v352_v63, %v1088_v44  ;;  %v432_v25 = vadd.f32 %v368_v32, %v1089_v24  ;;  %v281_v8 = vadd.f32 %v916_v9, %v280_v33  ;;  %v329_v60 = vadd.f32 %v916_v9, %v328_v15  ;;  %v1100_v32 = vld [vmem:[#allocation25_spill] sm:$0xff]  ;;  %v1101_v15 = vld [vmem:[#allocation26_spill] sm:$0xff] }
 0x112   :  { %480 = vst [vmem:[#allocation7 + $0x60] sm:$0xff] %v416_v45  ;;  %v384_v61 = vmax.f32 %v281_v8, 0.0  ;;  %v400_v22 = vmax.f32 %v329_v60, 0.0  ;;  %v1102_v60 = vld [vmem:[#allocation23_spill] sm:$0xff] }
 0x113   :  { %496 = vst [vmem:[#allocation7 + $0xe0] sm:$0xff] %v432_v25  ;;  %v187_v23 = vpop.f32.mrf.mxu0  ;;  %v235_v38 = vpop.f32.mrf.mxu1 }
 0x114   :  { %v448_v51 = vadd.f32 %v384_v61, %v1090_v50  ;;  %v464_v11 = vadd.f32 %v400_v22, %v1091_v39  ;;  %v188_v5 = vadd.f32 %v916_v9, %v187_v23  ;;  %v236_v10 = vadd.f32 %v916_v9, %v235_v38  ;;  %v1103_v22 = vld [vmem:[#allocation24_spill] sm:$0xff] }
 0x116   :  { %512 = vst [vmem:[#allocation7 + $0x160] sm:$0xff] %v448_v51  ;;  %v353_v30 = vmax.f32 %v188_v5, 0.0  ;;  %v369_v31 = vmax.f32 %v236_v10, 0.0 }
 0x117   :  { %528 = vst [vmem:[#allocation7 + $0x1e0] sm:$0xff] %v464_v11  ;;  %v283_v48 = vpop.f32.mrf.mxu2  ;;  %v331_v49 = vpop.f32.mrf.mxu3 }
 0x118   :  { %v417_v36 = vadd.f32 %v353_v30, %v1092_v18  ;;  %v433_v19 = vadd.f32 %v369_v31, %v1093_v37  ;;  %v284_v4 = vadd.f32 %v916_v9, %v283_v48  ;;  %v332_v20 = vadd.f32 %v916_v9, %v331_v49 }
 0x11a   :  { %481 = vst [vmem:[#allocation7 + $0x68] sm:$0xff] %v417_v36  ;;  %v385_v54 = vmax.f32 %v284_v4, 0.0  ;;  %v401_v55 = vmax.f32 %v332_v20, 0.0 }
 0x11b   :  { %497 = vst [vmem:[#allocation7 + $0xe8] sm:$0xff] %v433_v19  ;;  %v190_v21 = vpop.f32.mrf.mxu0  ;;  %v238_v7 = vpop.f32.mrf.mxu1 }
 0x11c   :  { %v449_v42 = vadd.f32 %v385_v54, %v1094_v28  ;;  %v465_v29 = vadd.f32 %v401_v55, %v1095_v43  ;;  %v191_v52 = vadd.f32 %v916_v9, %v190_v21  ;;  %v239_v53 = vadd.f32 %v916_v9, %v238_v7 }
 0x11e   :  { %513 = vst [vmem:[#allocation7 + $0x168] sm:$0xff] %v449_v42  ;;  %v354_v6 = vmax.f32 %v191_v52, 0.0  ;;  %v370_v12 = vmax.f32 %v239_v53, 0.0 }
 0x11f   :  { %529 = vst [vmem:[#allocation7 + $0x1e8] sm:$0xff] %v465_v29  ;;  %v286_v1 = vpop.f32.mrf.mxu2  ;;  %v334_v13 = vpop.f32.mrf.mxu3 }
 0x120   :  { %v418_v40 = vadd.f32 %v354_v6, %v1096_v16  ;;  %v434_v59 = vadd.f32 %v370_v12, %v1097_v58  ;;  %v287_v41 = vadd.f32 %v916_v9, %v286_v1  ;;  %v335_v26 = vadd.f32 %v916_v9, %v334_v13 }
 0x122   :  { %482 = vst [vmem:[#allocation7 + $0x70] sm:$0xff] %v418_v40  ;;  %v386_v34 = vmax.f32 %v287_v41, 0.0  ;;  %v402_v35 = vmax.f32 %v335_v26, 0.0 }
 0x123   :  { %498 = vst [vmem:[#allocation7 + $0xf0] sm:$0xff] %v434_v59  ;;  %v193_v27 = vpop.f32.mrf.mxu0  ;;  %v241_v17 = vpop.f32.mrf.mxu1 }
 0x124   :  { %v450_v57 = vadd.f32 %v386_v34, %v1098_v56  ;;  %v466_v46 = vadd.f32 %v402_v35, %v1099_v0  ;;  %v194_v47 = vadd.f32 %v916_v9, %v193_v27  ;;  %v242_v2 = vadd.f32 %v916_v9, %v241_v17 }
 0x126   :  { %514 = vst [vmem:[#allocation7 + $0x170] sm:$0xff] %v450_v57  ;;  %v355_v3 = vmax.f32 %v194_v47, 0.0  ;;  %v371_v14 = vmax.f32 %v242_v2, 0.0 }
 0x127   :  { %530 = vst [vmem:[#allocation7 + $0x1f0] sm:$0xff] %v466_v46  ;;  %v289_v62 = vpop.f32.mrf.mxu2  ;;  %v337_v63 = vpop.f32.mrf.mxu3 }
 0x128   :  { %v419_v33 = vadd.f32 %v355_v3, %v1100_v32  ;;  %v435_v44 = vadd.f32 %v371_v14, %v1101_v15  ;;  %v290_v45 = vadd.f32 %v916_v9, %v289_v62  ;;  %v338_v24 = vadd.f32 %v916_v9, %v337_v63 }
 0x12a   :  { %483 = vst [vmem:[#allocation7 + $0x78] sm:$0xff] %v419_v33  ;;  %v387_v25 = vmax.f32 %v290_v45, 0.0  ;;  %v403_v8 = vmax.f32 %v338_v24, 0.0 }
 0x12b   :  { %499 = vst [vmem:[#allocation7 + $0xf8] sm:$0xff] %v435_v44 }
 0x12c   :  { %v451_v61 = vadd.f32 %v387_v25, %v1102_v60  ;;  %v467_v23 = vadd.f32 %v403_v8, %v1103_v22 }
 0x12e   :  { %515 = vst [vmem:[#allocation7 + $0x178] sm:$0xff] %v451_v61 }
 0x12f   :  { %531 = vst [vmem:[#allocation7 + $0x1f8] sm:$0xff] %v467_v23 }
 0x130   :  { %544 = dma.vmem_to_hbm [thread:$0]  %s537_s24, 8192, %s539_s27, [#allocation4], %s685_s20, %s685_s20, %s686_s21  }
 0x131   :  { %682 = dma.done.wait [#allocation4], 8192  }
 0x132   :  { %683 = vsyncadd [#allocation4], 4294959104 }
 0x133   :  { %549 = vsyncpa [#allocation3], 1 }
 0x134   :  { %550 = vsyncpa [#allocation6], 1 }
 0x135   :  { %551 = vsyncpa [#allocation4], 1 }

</bundles_post_ra>
